<compile_context>
chip_gen: v7x
topology: tpu7x:2x2x1
jax: 0.10.0
libtpu: 0.0.40
codegen_flags: <defaults>
</compile_context>

<pallas_src>
import functools

import jax
import jax.numpy as jnp
from jax import lax
from jax.experimental import pallas as pl
from jax.experimental.pallas import tpu as pltpu
from jax.scipy.linalg import solve_triangular


def _round_up(x, m):
    return ((x + m - 1) // m) * m


def _lda_scatter_kernel(lab_ref, x_ref, g1_ref, cs_ref):
    """Accumulate raw scatter statistics over the N tiles of one core-partition.

    g1_ref [Dp, Dp] += x~^T x~       (x~ = globally-centered, 1/sqrt(n_c-1)-scaled)
    cs_ref [Cp, Dp] += one_hot @ x~  (per-class sums of x~)
    """
    step = pl.program_id(1)

    @pl.when(step == 0)
    def _init():
        g1_ref[...] = jnp.zeros_like(g1_ref)
        cs_ref[...] = jnp.zeros_like(cs_ref)

    x = x_ref[...]                        # [tn, Dp]  bf16/f32, zero rows for padding
    lab = lab_ref[...]                    # [1, tn]   int32, -1 for padding
    cp = cs_ref.shape[0]
    tn = x.shape[0]

    # Lane-dense one-hot [Cp, tn]; padded samples (label -1) give all-zero columns.
    oh = (lax.broadcasted_iota(jnp.int32, (cp, tn), 0) == lab).astype(x.dtype)

    # Per-class sums: natural [Cp,tn] x [tn,Dp] MXU matmul (no operand transpose).
    cs_ref[...] += lax.dot_general(oh, x, (((1,), (0,)), ((), ())),
                                   preferred_element_type=jnp.float32)

    # Weighted raw second moment: G1 += x~^T x~ (contraction over the sample axis).
    g1_ref[...] += lax.dot_general(x, x, (((0,), (0,)), ((), ())),
                                   preferred_element_type=jnp.float32)


def deep_lda_v2_loss(features, labels, num_classes, *, r=0.001, n_components=None,
                     epsilon=1.0, block_n=1024, core_split=2,
                     matmul_dtype=jnp.bfloat16):
    """features: [N, D] float, labels: [N] int.  Returns the deepLDA_v2 scalar loss.

    matmul_dtype=jnp.bfloat16 runs the dominant Dp^2 matmul at the MXU-native rate
    (pre-centering makes this safe); pass jnp.float32 for strict f32 fidelity.
    """
    if n_components is None:
        n_components = num_classes - 1
    n, d = features.shape
    c = num_classes

    dp = _round_up(d, 128)                            # lane-dense feature dim
    cp = _round_up(c, 8)                              # sublane-dense class dim
    # N tile = multiple of the 256 MXU contraction width -> full contraction passes.
    tn = _round_up(min(block_n, max(n // core_split, 1)), 256)
    grid_n = -(-n // (core_split * tn))               # steps per core-partition
    n_pad = core_split * grid_n * tn

    feats = features.astype(jnp.float32)
    labs = labels.astype(jnp.int32)
    valid = (labs >= 0) & (labs < c)
    labs_c = jnp.clip(labs, 0, c - 1)

    # Tiny label-only glue: per-class counts and per-sample scale w_i.
    counts = jnp.zeros((c,), jnp.float32).at[labs_c].add(valid.astype(jnp.float32))
    # w_c = 1/sqrt(n_c-1) for n_c>=2, 1 for n_c==1 (its Sw term is removed exactly
    # in post-processing), 0 for empty classes / invalid labels.
    w_class = jnp.where(counts > 1.0, lax.rsqrt(jnp.maximum(counts - 1.0, 1.0)),
                        jnp.where(counts == 1.0, 1.0, 0.0))
    w_sample = jnp.where(valid, w_class[labs_c], 0.0)

    # Pre-center by the global mean + per-sample scale + cast: one fused,
    # memory-bound XLA prepass (removes cancellation risk; enables bf16 matmuls).
    mu = jnp.mean(feats, axis=0, keepdims=True)
    x_scaled = ((feats - mu) * w_sample[:, None]).astype(matmul_dtype)

    x_pad = jnp.zeros((n_pad, dp), matmul_dtype).at[:n, :d].set(x_scaled)
    lab_row = jnp.full((1, n_pad), -1, jnp.int32).at[0, :n].set(
        jnp.where(valid, labs_c, -1))

    itemsize = jnp.dtype(matmul_dtype).itemsize
    cost = pl.CostEstimate(
        flops=int(2 * n_pad * dp * (dp + cp)),
        transcendentals=0,
        bytes_accessed=int(n_pad * dp * itemsize + n_pad * 4
                           + core_split * (dp * dp + cp * dp) * 4))

    # VMEM: double-buffered feature + (8-sublane padded) label tiles plus one
    # resident accumulator pair; request margin but stay v7x-safe (<= 48 MiB).
    vmem_est = (2 * tn * dp * itemsize + 2 * 8 * tn * 4
                + 2 * (dp * dp + cp * dp) * 4)
    vmem_limit = int(min(max(2 * vmem_est, 32 << 20), 48 << 20))

    g1_parts, cs_parts = pl.pallas_call(
        _lda_scatter_kernel,
        out_shape=(jax.ShapeDtypeStruct((core_split, dp, dp), jnp.float32),
                   jax.ShapeDtypeStruct((core_split, cp, dp), jnp.float32)),
        grid=(core_split, grid_n),
        in_specs=[
            pl.BlockSpec((1, tn), lambda s, i: (0, s * grid_n + i)),   # labels row
            pl.BlockSpec((tn, dp), lambda s, i: (s * grid_n + i, 0)),  # features
        ],
        out_specs=(pl.BlockSpec((None, dp, dp), lambda s, i: (s, 0, 0)),
                   pl.BlockSpec((None, cp, dp), lambda s, i: (s, 0, 0))),
        compiler_params=pltpu.CompilerParams(
            dimension_semantics=("parallel", "arbitrary"),
            vmem_limit_bytes=vmem_limit),
        cost_estimate=cost,
    )(lab_row, x_pad)

    # Tiny C*D post-work in plain JAX (was the in-kernel finalize).
    g1 = jnp.sum(g1_parts, axis=0)[:d, :d]
    cs = jnp.sum(cs_parts, axis=0)[:c, :d]          # w_c-scaled per-class sums

    cnt = counts[:, None]
    # Sw_c correction: n_c/(n_c-1) mu'_c mu'_c^T == cs_c cs_c^T / n_c  (exactly
    # cancels the singleton-class G1 contribution when n_c == 1).
    g_corr = jnp.where(cnt > 0.0, 1.0 / jnp.maximum(cnt, 1.0), 0.0)
    # Sb coefficient per class in terms of the scaled sums.
    sb_coef = jnp.where(cnt > 1.0,
                        (cnt - 1.0) / (jnp.maximum(cnt, 1.0) * n),
                        jnp.where(cnt == 1.0, 1.0 / n, 0.0))

    eye = jnp.eye(d, dtype=jnp.float32)
    sw = (g1 - (cs * g_corr).T @ cs) / c + r * eye
    sb = (cs * sb_coef).T @ cs

    # TODO(synk): torch.linalg.eigvals / torch.linalg.inv (general non-symmetric eig)
    # have no TPU/Pallas primitive; since Sw is SPD (ridge) and Sb is symmetric, the
    # eigenvalues of inv(Sw) @ Sb are real and equal those of L^-1 Sb L^-T, Sw = L L^T.
    chol = jnp.linalg.cholesky(sw)
    y = solve_triangular(chol, sb, lower=True)
    a_sym = solve_triangular(chol, y.T, lower=True).T
    a_sym = 0.5 * (a_sym + a_sym.T)
    evals = jnp.linalg.eigvalsh(a_sym)               # ascending, real

    n_comp = min(n_components, d)
    top_n = evals[-n_comp:]
    thresh = jnp.min(top_n) + epsilon
    keep = (top_n <= thresh).astype(jnp.float32)
    loss = -jnp.sum(top_n * keep) / jnp.sum(keep)    # == -mean(top_k_evals)
    return loss


def _reference_loss(features, labels, num_classes, *, r, n_components, epsilon):
    """Pure-JAX two-pass reference mirroring the assumed PyTorch semantics."""
    n, d = features.shape
    feats = features.astype(jnp.float32)
    mu = feats.mean(axis=0)
    sw_list = []
    sb = jnp.zeros((d, d), jnp.float32)
    for cls in range(num_classes):
        m = (labels == cls).astype(jnp.float32)[:, None]
        n_c = m.sum()
        mean_c = (feats * m).sum(0) / jnp.maximum(n_c, 1.0)
        xc = (feats - mean_c) * m
        sw_c = xc.T @ xc / jnp.maximum(n_c - 1.0, 1.0)
        sw_c = jnp.where(n_c > 1.0, sw_c, jnp.zeros_like(sw_c))
        sw_list.append(sw_c)
        dm = (mean_c - mu)[:, None]
        sb = sb + jnp.where(n_c > 0.0, (n_c / n) * (dm @ dm.T), jnp.zeros((d, d)))
    sw = jnp.mean(jnp.stack(sw_list, 0), axis=0) + r * jnp.eye(d, dtype=jnp.float32)
    chol = jnp.linalg.cholesky(sw)
    y = solve_triangular(chol, sb, lower=True)
    a_sym = solve_triangular(chol, y.T, lower=True).T
    a_sym = 0.5 * (a_sym + a_sym.T)
    evals = jnp.linalg.eigvalsh(a_sym)
    top_n = evals[-min(n_components, d):]
    thresh = jnp.min(top_n) + epsilon
    keep = (top_n <= thresh).astype(jnp.float32)
    return -jnp.sum(top_n * keep) / jnp.sum(keep)


if __name__ == "__main__":
    key = jax.random.PRNGKey(0)
    k1, k2 = jax.random.split(key)

    num_classes = 4
    n, d = 256, 64                        # small demo shapes

    features = jax.random.normal(k1, (n, d), dtype=jnp.float32)
    labels = jax.random.randint(k2, (n,), 0, num_classes, dtype=jnp.int32)

    # Default (bf16 MXU-native matmuls, pre-centered).
    loss = deep_lda_v2_loss(features, labels, num_classes, r=0.001,
                            n_components=num_classes - 1, epsilon=1.0)
    jax.block_until_ready(loss)

    # Strict-fidelity f32 path.
    loss_f32 = deep_lda_v2_loss(features, labels, num_classes, r=0.001,
                                n_components=num_classes - 1, epsilon=1.0,
                                matmul_dtype=jnp.float32)
    jax.block_until_ready(loss_f32)

    ref = _reference_loss(features, labels, num_classes, r=0.001,
                          n_components=num_classes - 1, epsilon=1.0)

    assert bool(jnp.isfinite(loss)), loss
    assert jnp.allclose(loss_f32, ref, rtol=1e-3, atol=1e-3), (loss_f32, ref)
    assert jnp.allclose(loss, ref, rtol=2e-2, atol=2e-2), (loss, ref)

    print("KERNEL_OK")
</pallas_src>

<mosaic_0001>
module attributes {stable_mosaic.version = 11 : i64} {
  func.func @_lda_scatter_kernel(%arg0: i32, %arg1: i32, %arg2: memref<1x256xi32, #tpu.memory_space<vmem>>, %arg3: memref<256x128xbf16, #tpu.memory_space<vmem>>, %arg4: memref<1x128x128xf32, #tpu.memory_space<vmem>>, %arg5: memref<1x8x128xf32, #tpu.memory_space<vmem>>) attributes {dimension_semantics = [#tpu.dimension_semantics<parallel>, #tpu.dimension_semantics<arbitrary>], iteration_bounds = array<i64: 2, 1>, scalar_prefetch = 0 : i64, scratch_operands = 0 : i64, tpu.core_type = #tpu.core_type<tc>, window_params = [{transform_indices = @transform_0, window_bounds = array<i64: 1, 256>}, {transform_indices = @transform_1, window_bounds = array<i64: 256, 128>}, {transform_indices = @transform_2, window_bounds = array<i64: 1, 128, 128>}, {transform_indices = @transform_3, window_bounds = array<i64: 1, 8, 128>}]} {
    %c0_i32 = arith.constant 0 : i32
    %0 = arith.cmpi eq, %arg1, %c0_i32 : i32
    %1 = arith.extui %0 : i1 to i32
    %c0_i32_0 = arith.constant 0 : i32
    %2 = arith.cmpi ne, %1, %c0_i32_0 : i32
    scf.if %2 {
      %cst_17 = arith.constant 0.000000e+00 : f32
      %25 = vector.broadcast %cst_17 : f32 to vector<128x128xf32>
      %c0_18 = arith.constant 0 : index
      %c0_19 = arith.constant 0 : index
      %c0_20 = arith.constant 0 : index
      %26 = vector.load %arg4[%c0_18, %c0_19, %c0_20] : memref<1x128x128xf32, #tpu.memory_space<vmem>>, vector<1x128x128xf32>
      %27 = vector.shape_cast %26 : vector<1x128x128xf32> to vector<128x128xf32>
      %28 = vector.shape_cast %25 : vector<128x128xf32> to vector<1x128x128xf32>
      tpu.vector_store %arg4[%c0_18, %c0_19, %c0_20], %28 {strides = array<i32>} : memref<1x128x128xf32, #tpu.memory_space<vmem>>, vector<1x128x128xf32>,
      %cst_21 = arith.constant 0.000000e+00 : f32
      %29 = vector.broadcast %cst_21 : f32 to vector<8x128xf32>
      %c0_22 = arith.constant 0 : index
      %c0_23 = arith.constant 0 : index
      %c0_24 = arith.constant 0 : index
      %30 = vector.load %arg5[%c0_22, %c0_23, %c0_24] : memref<1x8x128xf32, #tpu.memory_space<vmem>>, vector<1x8x128xf32>
      %31 = vector.shape_cast %30 : vector<1x8x128xf32> to vector<8x128xf32>
      %32 = vector.shape_cast %29 : vector<8x128xf32> to vector<1x8x128xf32>
      tpu.vector_store %arg5[%c0_22, %c0_23, %c0_24], %32 {strides = array<i32>} : memref<1x8x128xf32, #tpu.memory_space<vmem>>, vector<1x8x128xf32>,
    } else {
    }
    %c0 = arith.constant 0 : index
    %c0_1 = arith.constant 0 : index
    %3 = vector.load %arg3[%c0, %c0_1] : memref<256x128xbf16, #tpu.memory_space<vmem>>, vector<256x128xbf16>
    %c0_2 = arith.constant 0 : index
    %c0_3 = arith.constant 0 : index
    %4 = vector.load %arg2[%c0_2, %c0_3] : memref<1x256xi32, #tpu.memory_space<vmem>>, vector<1x256xi32>
    %5 = tpu.iota {dimensions = array<i32: 0>} : vector<8x256xi32>
    %6 = vector.broadcast %4 : vector<1x256xi32> to vector<8x256xi32>
    %7 = arith.cmpi eq, %5, %6 : vector<8x256xi32>
    %8 = arith.extui %7 : vector<8x256xi1> to vector<8x256xi32>
    %9 = arith.sitofp %8 : vector<8x256xi32> to vector<8x256xf32>
    %10 = arith.truncf %9 : vector<8x256xf32> to vector<8x256xbf16>
    %c0_4 = arith.constant 0 : index
    %c0_5 = arith.constant 0 : index
    %c0_6 = arith.constant 0 : index
    %11 = vector.load %arg5[%c0_4, %c0_5, %c0_6] : memref<1x8x128xf32, #tpu.memory_space<vmem>>, vector<1x8x128xf32>
    %12 = vector.shape_cast %11 : vector<1x8x128xf32> to vector<8x128xf32>
    %cst = arith.constant dense<0.000000e+00> : vector<8x128xf32>
    %13 = tpu.matmul %10, %3, %cst {dimension_numbers = #tpu.dot_dimension_numbers<[1], [0], [0], [1], [0, 0, 1, 1], [], []>} : vector<8x256xbf16>, vector<256x128xbf16>, vector<8x128xf32> -> vector<8x128xf32>
    %14 = arith.addf %12, %13 : vector<8x128xf32>
    %c0_7 = arith.constant 0 : index
    %c0_8 = arith.constant 0 : index
    %c0_9 = arith.constant 0 : index
    %15 = vector.load %arg5[%c0_7, %c0_8, %c0_9] : memref<1x8x128xf32, #tpu.memory_space<vmem>>, vector<1x8x128xf32>
    %16 = vector.shape_cast %15 : vector<1x8x128xf32> to vector<8x128xf32>
    %17 = vector.shape_cast %14 : vector<8x128xf32> to vector<1x8x128xf32>
    tpu.vector_store %arg5[%c0_7, %c0_8, %c0_9], %17 {strides = array<i32>} : memref<1x8x128xf32, #tpu.memory_space<vmem>>, vector<1x8x128xf32>,
    %c0_10 = arith.constant 0 : index
    %c0_11 = arith.constant 0 : index
    %c0_12 = arith.constant 0 : index
    %18 = vector.load %arg4[%c0_10, %c0_11, %c0_12] : memref<1x128x128xf32, #tpu.memory_space<vmem>>, vector<1x128x128xf32>
    %19 = vector.shape_cast %18 : vector<1x128x128xf32> to vector<128x128xf32>
    %cst_13 = arith.constant dense<0.000000e+00> : vector<128x128xf32>
    %20 = tpu.matmul %3, %3, %cst_13 {dimension_numbers = #tpu.dot_dimension_numbers<[0], [0], [1], [1], [0, 1, 1, 1], [], []>} : vector<256x128xbf16>, vector<256x128xbf16>, vector<128x128xf32> -> vector<128x128xf32>
    %21 = arith.addf %19, %20 : vector<128x128xf32>
    %c0_14 = arith.constant 0 : index
    %c0_15 = arith.constant 0 : index
    %c0_16 = arith.constant 0 : index
    %22 = vector.load %arg4[%c0_14, %c0_15, %c0_16] : memref<1x128x128xf32, #tpu.memory_space<vmem>>, vector<1x128x128xf32>
    %23 = vector.shape_cast %22 : vector<1x128x128xf32> to vector<128x128xf32>
    %24 = vector.shape_cast %21 : vector<128x128xf32> to vector<1x128x128xf32>
    tpu.vector_store %arg4[%c0_14, %c0_15, %c0_16], %24 {strides = array<i32>} : memref<1x128x128xf32, #tpu.memory_space<vmem>>, vector<1x128x128xf32>,
    return
  }
  func.func @transform_0(%arg0: i32, %arg1: i32) -> (i32, i32) {
    %c1_i32 = arith.constant 1 : i32
    %0 = arith.muli %arg0, %c1_i32 : i32
    %1 = arith.addi %0, %arg1 : i32
    %c0_i32 = arith.constant 0 : i32
    %c0_i32_0 = arith.constant 0 : i32
    return %c0_i32, %1 : i32, i32
  }
  func.func @transform_1(%arg0: i32, %arg1: i32) -> (i32, i32) {
    %c1_i32 = arith.constant 1 : i32
    %0 = arith.muli %arg0, %c1_i32 : i32
    %1 = arith.addi %0, %arg1 : i32
    %c0_i32 = arith.constant 0 : i32
    %c0_i32_0 = arith.constant 0 : i32
    return %1, %c0_i32 : i32, i32
  }
  func.func @transform_2(%arg0: i32, %arg1: i32) -> (i32, i32, i32) {
    %c0_i32 = arith.constant 0 : i32
    %c0_i32_0 = arith.constant 0 : i32
    %c0_i32_1 = arith.constant 0 : i32
    return %arg0, %c0_i32, %c0_i32_0 : i32, i32, i32
  }
  func.func @transform_3(%arg0: i32, %arg1: i32) -> (i32, i32, i32) {
    %c0_i32 = arith.constant 0 : i32
    %c0_i32_0 = arith.constant 0 : i32
    %c0_i32_1 = arith.constant 0 : i32
    return %arg0, %c0_i32, %c0_i32_0 : i32, i32, i32
  }
}

</mosaic_0001>

<bundles_post_ra>
// kernel: tpu_custom_call.1
= control target key start
LH: loop header
LB: loop body
LE: loop exit
PB: predicated region body
PF: predicated region fallthrough
CT: control target
= control target key end

     0   :  { %9 = vsyncpa [#allocation3], 0  ;;  %s1607_s0 = inlined_call_operand.hbm [shape: s32[1,512], index: 0, kind: input, shape index: {}]   ;;  %s1608_s1 = inlined_call_operand.hbm [shape: bf16[512,128], index: 1, kind: input, shape index: {}]   ;;  %s1609_s2 = inlined_call_operand.hbm [shape: f32[2,128,128], index: 2, kind: output, shape index: {0}]   ;;  %s1610_s3 = inlined_call_operand.hbm [shape: f32[2,8,128], index: 3, kind: output, shape index: {1}]  }
   0x1   :  { %11 = vsyncpa [#allocation3 + $0x1], 0 }
   0x2   :  { %12 = vsyncpa [#allocation6], 0 }
   0x3   :  { %14 = vsyncpa [#allocation6 + $0x1], 0 }
   0x4   :  { %15 = vsyncpa [#allocation4], 0 }
   0x5   :  { %17 = vsyncpa [#allocation4 + $0x1], 0 }
   0x6   :  { %18 = vsyncpa [#allocation9], 0 }
   0x7   :  { %20 = vsyncpa [#allocation9 + $0x1], 0  ;;  %s1271_s12 = smov 0   ;;  %s1273_s13 = smov 0  }
   0x8   :  { %s1275_s14 = smov 0   ;;  %s1277_s15 = smov 0  }
   0x9   :  { %s1279_s16 = smov 0   ;;  %s1281_s17 = smov 0  }
   0xa LB: > { %s819_s18 = sadd.s32 4294967295, %s1240_s17   ;;  %s820_s19 = sadd.s32 4294967294, %s1240_s17   ;;  %s1240_s17 = sphi %s1281_s17, %s26_s17   ;;  %s1236_s16 = sphi %s1279_s16, %s1629_s16   ;;  %s1232_s15 = sphi %s1277_s15, %s1628_s15   ;;  %s1228_s14 = sphi %s1275_s14, %s1627_s14   ;;  %s1224_s13 = sphi %s1273_s13, %s1626_s13   ;;  %s1220_s12 = sphi %s1271_s12, %s1625_s12  }
   0xb   : > { %s38_s20 = sadd.s32 1, %s1236_s16  ;;  %s47_s21 = sadd.s32 1, %s1228_s14 }
   0xc   : > { %p40_p0 = scmp.ge.s32.totalorder %s38_s20, 2  ;;  %p54_p1 = scmp.ne.s32.totalorder %s1228_s14, %s1224_s13 }
   0xd   : > { %p55_p2 = scmp.eq.s32.totalorder %s1240_s17, 0  ;;  %p60_p3 = scmp.ne.s32.totalorder %s1224_s13, %s1220_s12 }
   0xe   : > { %s1631_s20 = smov (%p40_p0, %s38_s20), 0  ;;  %p61_p5 = scmp.eq.s32.totalorder %s819_s18, 0 }
   0xf   : > { %p1312_p4 = por %p55_p2, %p54_p1  ;;  %s44_s23 = ssub.s32 %s1236_s16, %s1631_s20 }
  0x10   : > { %p112_p6 = scmp.eq.s32.totalorder %s819_s18, 1  ;;  %p45_p7 = scmp.eq.s32.totalorder %s44_s23, 0 }
  0x11   : > { %p1318_p8 = por %p61_p5, %p60_p3  ;;  %p118_p10 = scmp.eq.s32.totalorder %s820_s19, 1 }
  0x12   : > { %p1322_p9 = por %p112_p6, %p54_p1  ;;  %p990_p13 = scmp.lt.s32.totalorder %s1240_s17, 2 }
  0x13   : > { %s1614_s24 = scalar_select %p1318_p8, 1, 0 }
  0x14   : > { %s1615_s25 = scalar_select %p1322_p9, 1, 0 }
  0x15   : > { %s1327_s26 = scalar_select %p45_p7, %s1228_s14, %s47_s21  }
  0x16   : > { %p1329_p11 = por %p118_p10, %p60_p3  ;;  %s1336_s28 = sand.u32 1, %s1228_s14  }
  0x17   : > { %s823_s29 = sshll.u32 %s1336_s28, 1  ;;  %s863_s30 = sshll.u32 %s1236_s16, 5 }
  0x18   : > { %s1616_s27 = scalar_select %p1329_p11, 1, 0 }
  0x19   : > { %s1343_s6 = scalar_lea.hbm %s1607_s0, %s863_s30  ;;  %s168_s7 = scalar_lea.vmem [#allocation2], %s823_s29 }
  0x1a   : > { %s177_s8 = sshll.u32 %s168_s7, 4  ;;  %p1349_p0 = pnand %p990_p13, %p1312_p4  ;;  %s1345_s8 = int_to_ptr.vmem [resolvable:$true] %s177_s8 }
  0x1b   : > { %s165_s10 = scalar_lea.sflag [#allocation3], %s1336_s28  ;;  %s1062_s11 = scalar_lea.hbm %s1343_s6, 32 }
  0x1c   : > { %p1063_p3 = scmp.ne.s32.totalorder %s1343_s6, %s1062_s11  ;;  %p1064_p5 = pneg %p1349_p0 }
  0x1d   : > { %s1067_s21 = scalar_lea.hbm %s1607_s0, 64  ;;  %p1068_p4 = scmp.lt.u32.totalorder %s1343_s6, %s1607_s0 }
  0x1e   : > { %p1065_p6 = pnand %p1064_p5, %p1063_p3  ;;  %p1069_p10 = scmp.lt.u32.totalorder %s1067_s21, %s1062_s11 }
  0x1f   : > { %p1071_p12 = scmp.lt.u32.totalorder %s1062_s11, %s1343_s6 }
  0x20   : > { %p1066_p7 = pneg %p1065_p6  ;;  %p1070_p13 = por %p1069_p10, %p1068_p4 }
  0x22   : > { %p1072_p1 = por %p1071_p12, %p1070_p13 }
  0x24   : > { %p1073_p2 = pnand %p1072_p1, %p1066_p7 }
  0x26   : > { %1076 = shalt.err (!%p1073_p2)
}
  0x27   : > { %s1077_s29 = scalar_lea.vmem %s1345_s8, 32  ;;  %s1242_s30 = smov [#allocation2]  }
  0x28   : > { %p1078_p3 = scmp.ne.s32.totalorder %s1345_s8, %s1077_s29  ;;  %s1082_s4 = sshll.u32 %s1242_s30, 4  ;;  %s1083_s4 = int_to_ptr.vmem [resolvable:$false] %s1082_s4 }
  0x29   : > { %s1084_s5 = scalar_lea.vmem %s1083_s4, 64  ;;  %p1085_p9 = scmp.lt.s32.totalorder %s1345_s8, %s1083_s4 }
  0x2a   : > { %p1080_p6 = pnand %p1078_p3, %p1064_p5  ;;  %p1086_p4 = scmp.lt.s32.totalorder %s1084_s5, %s1077_s29 }
  0x2c   : > { %p1081_p11 = pneg %p1080_p6  ;;  %p1087_p10 = por %p1086_p4, %p1085_p9 }
  0x2e   : > { %p1088_p12 = pnand %p1087_p10, %p1081_p11 }
  0x30   : > { %1091 = shalt.err (!%p1088_p12)
}
  0x31   : > { %979 = dma.hbm_to_vmem [thread:$0]  (!%p1349_p0), %s1343_s6, 32, %s1345_s8, %s165_s10  }
  0x32   : > { %p1618_p1 = scmp.lt.s32.totalorder %s1240_s17, 3  ;;  %p1619_p2 = scmp.ge.s32.totalorder %s1240_s17, 1 }
  0x33   : > { %s826_s11 = sshll.u32 %s1336_s28, 7  ;;  %s864_s18 = sshll.u32 %s1236_s16, 11 }
  0x34   : > { %p1385_p7 = pnand %p1619_p2, %p1618_p1  ;;  %s1394_s22 = scalar_lea.hbm %s1608_s1, %s864_s18 }
  0x35   : > { %s188_s23 = scalar_lea.vmem [#allocation5], %s826_s11  ;;  %s185_s6 = scalar_lea.sflag [#allocation6], %s1336_s28 }
  0x36   : > { %s196_s29 = sshll.u32 %s188_s23, 4  ;;  %s1092_s8 = scalar_lea.hbm %s1394_s22, 2048  ;;  %s1396_s29 = int_to_ptr.vmem [resolvable:$true] %s196_s29 }
  0x37   : > { %p1093_p9 = scmp.ne.s32.totalorder %s1394_s22, %s1092_s8  ;;  %s1097_s4 = scalar_lea.hbm %s1608_s1, 4096 }
  0x38   : > { %p1098_p3 = scmp.lt.u32.totalorder %s1394_s22, %s1608_s1  ;;  %p1099_p6 = scmp.lt.u32.totalorder %s1097_s4, %s1092_s8 }
  0x39   : > { %p1095_p11 = pnand %p1093_p9, %p1064_p5  ;;  %p1101_p10 = scmp.lt.u32.totalorder %s1092_s8, %s1394_s22 }
  0x3a   : > { %p1100_p4 = por %p1099_p6, %p1098_p3 }
  0x3b   : > { %p1096_p13 = pneg %p1095_p11 }
  0x3c   : > { %p1102_p12 = por %p1101_p10, %p1100_p4 }
  0x3e   : > { %p1103_p1 = pnand %p1102_p12, %p1096_p13 }
  0x40   : > { %1106 = shalt.err (!%p1103_p1)
}
  0x41   : > { %s1107_s11 = scalar_lea.vmem %s1396_s29, 2048  ;;  %s1243_s19 = smov [#allocation5]  }
  0x42   : > { %p1108_p2 = scmp.ne.s32.totalorder %s1396_s29, %s1107_s11  ;;  %s1112_s21 = sshll.u32 %s1243_s19, 4  ;;  %s1113_s21 = int_to_ptr.vmem [resolvable:$false] %s1112_s21 }
  0x43   : > { %s1114_s23 = scalar_lea.vmem %s1113_s21, 4096  ;;  %p1115_p8 = scmp.lt.s32.totalorder %s1396_s29, %s1113_s21 }
  0x44   : > { %p1110_p9 = pnand %p1108_p2, %p1064_p5  ;;  %p1116_p3 = scmp.lt.s32.totalorder %s1114_s23, %s1107_s11 }
  0x46   : > { %p1111_p11 = pneg %p1110_p9  ;;  %p1117_p6 = por %p1116_p3, %p1115_p8 }
  0x48   : > { %p1118_p4 = pnand %p1117_p6, %p1111_p11 }
  0x4a   : > { %1121 = shalt.err (!%p1118_p4)
}
  0x4b   : > { %s1244_s8 = smov 64   ;;  %s1245_s10 = smov 4  }
  0x4c   : > { %982 = dma.hbm_to_vmem [thread:$0]  (!%p1349_p0), %s1394_s22, 2048, %s1396_s29, %s185_s6, %s1244_s8, %s1244_s8, %s1245_s10  }
  0x4d   : > { %208 = sbr.rel (%p1385_p7) target bundleno = 473 (0x1d9), region = 28  ;;  %s1427_s30 = sand.u32 (!%p1385_p7), 1, %s1224_s13  }
  0x4e   : > { %s830_s4 = sshll.u32 (!%p1385_p7), %s1427_s30, 1  ;;  %s211_s5 = scalar_lea.sflag (!%p1385_p7), [#allocation3], %s1427_s30 }
  0x4f   : > { %s1431_s18 = scalar_lea.vmem (!%p1385_p7), [#allocation2], %s830_s4  ;;  %p1621_p8 = scmp.ne.s32.totalorder (!%p1385_p7), %s1614_s24, 0 }
  0x54   : > { %1203 = dma.done.wait (%p1621_p8), %s211_s5, 32  }
  0x55   : > { %1205 = vsyncadd (%p1621_p8), %s211_s5, 4294967264  ;;  %s831_s28 = sshll.u32 %s1427_s30, 7  ;;  %s220_s9 = scalar_lea.sflag [#allocation6], %s1427_s30 }
  0x56   : > { %s1441_s7 = scalar_lea.vmem [#allocation5], %s831_s28 }
  0x57   : > { %1207 = dma.done.wait (%p1621_p8), %s220_s9, 2048  }
  0x58   : > { %1209 = vsyncadd (%p1621_p8), %s220_s9, 4294965248  ;;  %v1448_v0 = vld [vmem:[%s1441_s7 + $0x40] sm:$0xff]   ;;  %v1455_v2 = vld [vmem:[%s1441_s7 + $0x48] sm:$0xff]   ;;  %v315_v4 = vlaneseq  ;;  %v1246_v18 = vmov 1.0|1.0   ;;  %s833_s24 = sshll.u32 %s1427_s30, 3 }
  0x59   : > { %v1451_v1 = vld [vmem:[%s1441_s7] sm:$0xff]   ;;  %504 = vxpose.xlu0.c.b16.start [1/8] %v1448_v0, 128  ;;  %866 = vmatprep.subr.bf16.mxu0 %v1448_v0  ;;  %v1460_v3 = vld [vmem:[%s1441_s7 + $0x8] sm:$0xff]   ;;  %v1468_v5 = vld [vmem:[%s1441_s7 + $0x50] sm:$0xff]   ;;  %s860_s22 = sshll.u32 %s1232_s15, 7  ;;  %s255_s29 = scalar_lea.vmem [#allocation8], %s833_s24 }
  0x5a   : > { %488 = vxpose.xlu1.c.b16.start [1/8] %v1451_v1, 128  ;;  %867 = vmatpush3.bf16.msra.mxu0 %v1451_v1  ;;  %v1473_v6 = vld [vmem:[%s1441_s7 + $0x10] sm:$0xff]   ;;  %v316_v7 = vshrl.u32 %v315_v4, 7  ;;  %v1052_v8 = vld [vmem:[%s1441_s7 + $0x58] sm:$0xff]   ;;  %v1054_v11 = vld [vmem:[%s1441_s7 + $0x60] sm:$0xff]   ;;  %s684_s6 = sshll.u32 %s255_s29, 4  ;;  %s1505_s21 = scalar_lea.hbm %s1610_s3, %s860_s22  ;;  %s1507_s6 = int_to_ptr.vmem [resolvable:$true] %s684_s6 }
  0x5b   : > { %868 = vmatprep.subr.bf16.mxu0 %v1455_v2  ;;  %952 = vmatprep.subr.bf16.mxu1 %v1448_v0  ;;  %v1053_v9 = vld [vmem:[%s1441_s7 + $0x18] sm:$0xff]   ;;  %v1055_v12 = vld [vmem:[%s1441_s7 + $0x20] sm:$0xff]   ;;  %v1056_v15 = vld [vmem:[%s1441_s7 + $0x68] sm:$0xff]   ;;  %s655_s23 = scalar_lea.sflag [#allocation9], %s1427_s30  ;;  %s1122_s8 = scalar_lea.vmem %s1507_s6, 128 }
  0x5c   : > { %960 = vmatpush3.bf16.msra.mxu1 %v1451_v1  ;;  %v323_v10 = vsub.s32 1, %v316_v7  ;;  %v314_v13 = vld [vmem:[%s1431_s18] sm:$0x3]  ;;  %v1057_v16 = vld [vmem:[%s1441_s7 + $0x28] sm:$0xff]   ;;  %v319_v17 = vsub.s32 0, %v316_v7  ;;  %v1058_v19 = vld [vmem:[%s1441_s7 + $0x70] sm:$0xff]   ;;  %p1123_p0 = scmp.ne.s32.totalorder %s1507_s6, %s1122_s8 }
  0x5d   : > { %505 = vxpose.xlu0.c.b16.cont [2/8] %v1455_v2, 128  ;;  %953 = vmatprep.subr.bf16.mxu1 %v1455_v2  ;;  %v1059_v20 = vld [vmem:[%s1441_s7 + $0x30] sm:$0xff]   ;;  %v1060_v22 = vld [vmem:[%s1441_s7 + $0x78] sm:$0xff]   ;;  %p1622_p5 = scmp.ne.s32.totalorder %s1615_s25, 0  ;;  %s1247_s10 = smov [#allocation8]  }
  0x5e   : > { %489 = vxpose.xlu1.c.b16.cont [2/8] %v1460_v3, 128  ;;  %869 = vmatpush3.bf16.msra.mxu0 %v1460_v3  ;;  %v324_v14 = vrot.slane %v314_v13, %v323_v10  ;;  %v320_v21 = vrot.slane %v314_v13, %v319_v17  ;;  %v1061_v23 = vld [vmem:[%s1441_s7 + $0x38] sm:$0xff]   ;;  %s1126_s4 = sshll.u32 %s1247_s10, 4  ;;  %s1127_s4 = int_to_ptr.vmem [resolvable:$false] %s1126_s4 }
  0x5f   : > { %870 = vmatprep.subr.bf16.mxu0 %v1468_v5  ;;  %p1124_p7 = pnand %p1123_p0, %p1622_p5  ;;  %s1128_s5 = scalar_lea.vmem %s1127_s4, 256 }
  0x60   : > { %961 = vmatpush3.bf16.msra.mxu1 %v1460_v3  ;;  %vm326_vm0 = vcmp.eq.s32.totalorder %v316_v7, %v324_v14  ;;  %vm325_vm2 = vcmp.eq.s32.totalorder %v316_v7, %v320_v21  ;;  %p1129_p10 = scmp.lt.s32.totalorder %s1507_s6, %s1127_s4  ;;  %p1130_p12 = scmp.lt.s32.totalorder %s1128_s5, %s1122_s8 }
  0x61   : > { %506 = vxpose.xlu0.c.b16.cont [3/8] %v1468_v5, 128  ;;  %954 = vmatprep.subr.bf16.mxu1 %v1468_v5  ;;  %vm852_vm1 = vmpackc.low %vm326_vm0, %vm326_vm0  ;;  %p1125_p13 = pneg %p1124_p7 }
  0x62   : > { %490 = vxpose.xlu1.c.b16.cont [3/8] %v1473_v6, 128  ;;  %871 = vmatpush3.bf16.msra.mxu0 %v1473_v6  ;;  %vm854_vm3 = vmpackc.low %vm325_vm2, %vm325_vm2  ;;  %p1131_p1 = por %p1130_p12, %p1129_p10 }
  0x63   : > { %872 = vmatprep.subr.bf16.mxu0 %v1052_v8  ;;  %853 = vmatprep.mubr.msk.bf16.mxu0 %vm852_vm1, %v1246_v18 }
  0x64   : > { %962 = vmatpush3.bf16.msra.mxu1 %v1473_v6  ;;  %p1132_p2 = pnand %p1131_p1, %p1125_p13 }
  0x65   : > { %507 = vxpose.xlu0.c.b16.cont [4/8] %v1052_v8, 128  ;;  %955 = vmatprep.subr.bf16.mxu1 %v1052_v8 }
  0x66   : > { %491 = vxpose.xlu1.c.b16.cont [4/8] %v1053_v9, 128  ;;  %873 = vmatpush3.bf16.msra.mxu0 %v1053_v9 }
  0x67   : > { %874 = vmatprep.subr.bf16.mxu0 %v1054_v11 }
  0x68   : > { %963 = vmatpush3.bf16.msra.mxu1 %v1053_v9 }
  0x69   : > { %508 = vxpose.xlu0.c.b16.cont [5/8] %v1054_v11, 128  ;;  %956 = vmatprep.subr.bf16.mxu1 %v1054_v11 }
  0x6a   : > { %492 = vxpose.xlu1.c.b16.cont [5/8] %v1055_v12, 128  ;;  %875 = vmatpush3.bf16.msra.mxu0 %v1055_v12 }
  0x6b   : > { %876 = vmatprep.subr.bf16.mxu0 %v1056_v15 }
  0x6c   : > { %964 = vmatpush3.bf16.msra.mxu1 %v1055_v12 }
  0x6d   : > { %509 = vxpose.xlu0.c.b16.cont [6/8] %v1056_v15, 128  ;;  %957 = vmatprep.subr.bf16.mxu1 %v1056_v15 }
  0x6e   : > { %493 = vxpose.xlu1.c.b16.cont [6/8] %v1057_v16, 128  ;;  %877 = vmatpush3.bf16.msra.mxu0 %v1057_v16 }
  0x6f   : > { %878 = vmatprep.subr.bf16.mxu0 %v1058_v19 }
  0x70   : > { %965 = vmatpush3.bf16.msra.mxu1 %v1057_v16 }
  0x71   : > { %510 = vxpose.xlu0.c.b16.cont [7/8] %v1058_v19, 128  ;;  %958 = vmatprep.subr.bf16.mxu1 %v1058_v19 }
  0x72   : > { %494 = vxpose.xlu1.c.b16.cont [7/8] %v1059_v20, 128  ;;  %879 = vmatpush3.bf16.msra.mxu0 %v1059_v20 }
  0x73   : > { %880 = vmatprep.subr.bf16.mxu0 %v1060_v22 }
  0x74   : > { %966 = vmatpush3.bf16.msra.mxu1 %v1059_v20 }
  0x75   : > { %511 = vxpose.xlu0.c.b16.end [8/8] %v1060_v22, 128  ;;  %959 = vmatprep.subr.bf16.mxu1 %v1060_v22 }
  0x76   : > { %495 = vxpose.xlu1.c.b16.end [8/8] %v1061_v23, 128  ;;  %881 = vmatpush3.bf16.msra.mxu0 %v1061_v23 }
  0x77   : > { %888 = vmatprep.subr.bf16.mxu0 %v1448_v0 }
  0x78   : > { %967 = vmatpush3.bf16.msra.mxu1 %v1061_v23 }
  0x79   : > { %855 = vmatmul.mubr.msk.bf16.vlgmr.msra.gmra.mrb[0].mxu0 %vm854_vm3, %v1246_v18 }
  0x7a   : > { %889 = vmatpush3.bf16.msra.mxu0 %v1451_v1 }
  0x7b   : > { %890 = vmatprep.subr.bf16.mxu0 %v1455_v2 }
  0x7e   : > { %891 = vmatpush3.bf16.msra.mxu0 %v1460_v3 }
  0x7f   : > { %892 = vmatprep.subr.bf16.mxu0 %v1468_v5 }
  0x82   : > { %893 = vmatpush3.bf16.msra.mxu0 %v1473_v6 }
  0x83   : > { %894 = vmatprep.subr.bf16.mxu0 %v1052_v8 }
  0x86   : > { %895 = vmatpush3.bf16.msra.mxu0 %v1053_v9 }
  0x87   : > { %896 = vmatprep.subr.bf16.mxu0 %v1054_v11 }
  0x8a   : > { %897 = vmatpush3.bf16.msra.mxu0 %v1055_v12 }
  0x8b   : > { %898 = vmatprep.subr.bf16.mxu0 %v1056_v15 }
  0x8e   : > { %899 = vmatpush3.bf16.msra.mxu0 %v1057_v16 }
  0x8f   : > { %900 = vmatprep.subr.bf16.mxu0 %v1058_v19 }
  0x92   : > { %901 = vmatpush3.bf16.msra.mxu0 %v1059_v20 }
  0x93   : > { %902 = vmatprep.subr.bf16.mxu0 %v1060_v22 }
  0x96   : > { %903 = vmatpush3.bf16.msra.mxu0 %v1061_v23 }
  0xbf   : > { %v512_v24 = vpop.trf.xlu0 }
  0xc0   : > { %v496_v25 = vpop.trf.xlu1  ;;  %552 = vmatprep.mubr.bf16.mxu0 %v512_v24 }
  0xc1   : > { %553 = vmatmul.mubr.bf16.vlgmr.msra.gmra.mrb[4].mxu0 %v496_v25 }
  0xc3   : > { %v513_v26 = vpop.trf.xlu0 }
  0xc4   : > { %v497_v27 = vpop.trf.xlu1  ;;  %560 = vmatprep.mubr.bf16.mxu0 %v513_v26 }
  0xc7   : > { %v514_v28 = vpop.trf.xlu0 }
  0xc8   : > { %568 = vmatprep.mubr.bf16.mxu1 %v514_v28  ;;  %v498_v29 = vpop.trf.xlu1 }
  0xc9   : > { %561 = vmatmul.mubr.bf16.gmra.mrb[8].mxu0 %v497_v27  ;;  %569 = vmatmul.mubr.bf16.vlgmr.msra.gmra.mrb[0].mxu1 %v498_v29 }
  0xcb   : > { %v515_v30 = vpop.trf.xlu0 }
  0xcc   : > { %576 = vmatprep.mubr.bf16.mxu1 %v515_v30  ;;  %v499_v31 = vpop.trf.xlu1 }
  0xcf   : > { %v516_v32 = vpop.trf.xlu0 }
  0xd0   : > { %v500_v33 = vpop.trf.xlu1 }
  0xd1   : > { %577 = vmatmul.mubr.bf16.gmra.mrb[4].mxu1 %v499_v31 }
  0xd2   : > { %584 = vmatprep.mubr.bf16.mxu1 %v516_v32 }
  0xd3   : > { %v517_v34 = vpop.trf.xlu0 }
  0xd4   : > { %v501_v35 = vpop.trf.xlu1 }
  0xd7   : > { %v518_v36 = vpop.trf.xlu0 }
  0xd8   : > { %v502_v37 = vpop.trf.xlu1 }
  0xd9   : > { %585 = vmatmul.mubr.bf16.gmra.mrb[8].mxu1 %v500_v33 }
  0xda   : > { %592 = vmatprep.mubr.bf16.mxu1 %v517_v34 }
  0xdb   : > { %v519_v38 = vpop.trf.xlu0 }
  0xdc   : > { %v503_v39 = vpop.trf.xlu1 }
  0xe1   : > { %593 = vmatmul.mubr.bf16.gmra.mrb[12].mxu1 %v501_v35 }
  0xe2   : > { %600 = vmatprep.mubr.bf16.mxu1 %v518_v36 }
  0xe9   : > { %601 = vmatmul.mubr.bf16.gmra.mrb[16].mxu1 %v502_v37 }
  0xea   : > { %608 = vmatprep.mubr.bf16.mxu1 %v519_v38 }
  0xf1   : > { %609 = vmatmul.mubr.bf16.gmra.mrb[20].mxu1 %v503_v39 }
 0x14c   : > { %v882_v40 = vpop.f32.mrb[0].mxu0 }
 0x14d   : > { %v883_v41 = vpop.f32.mrb[1].mxu0 }
 0x14e   : > { %v884_v42 = vadd.f32 %v883_v41, %v882_v40  ;;  %v885_v43 = vpop.f32.mrb[2].mxu0 }
 0x14f   : > { %v886_v44 = vpop.f32.mrb[3].mxu0 }
 0x150   : > { %471 = vst [vmem:[%s255_s29] sm:$0xff] %v884_v42 }
 0x151   : > { %1135 = shalt.err (!%p1132_p2)
}
 0x152   : > { %s1136_s18 = scalar_lea.hbm %s1505_s21, 128  ;;  %s1140_s24 = scalar_lea.hbm %s1610_s3, 256 }
 0x153   : > { %p1137_p9 = scmp.ne.s32.totalorder %s1505_s21, %s1136_s18  ;;  %p1141_p6 = scmp.lt.u32.totalorder %s1505_s21, %s1610_s3 }
 0x154   : > { %p1142_p4 = scmp.lt.u32.totalorder %s1140_s24, %s1136_s18  ;;  %p1144_p0 = scmp.lt.u32.totalorder %s1136_s18, %s1505_s21 }
 0x155   : > { %p1138_p11 = pnand %p1137_p9, %p1622_p5 }
 0x156   : > { %p1143_p8 = por %p1142_p4, %p1141_p6 }
 0x157   : > { %p1139_p3 = pneg %p1138_p11 }
 0x158   : > { %p1145_p7 = por %p1144_p0, %p1143_p8 }
 0x15a   : > { %p1146_p13 = pnand %p1145_p7, %p1139_p3 }
 0x15c   : > { %1149 = shalt.err (!%p1146_p13)
}
 0x15d   : > { %973 = dma.vmem_to_hbm [thread:$0]  (%p1622_p5), %s1507_s6, 128, %s1505_s21, %s655_s23  }
 0x15e   : > { %s1533_s11 = scalar_lea.vmem [#allocation7], %s831_s28  ;;  %s865_s28 = sshll.u32 %s1232_s15, 11 }
 0x15f   : > { %s668_s6 = sshll.u32 %s1533_s11, 4  ;;  %s1554_s23 = scalar_lea.hbm %s1609_s2, %s865_s28  ;;  %s1556_s6 = int_to_ptr.vmem [resolvable:$true] %s668_s6 }
 0x160   : > { %s650_s8 = scalar_lea.sflag [#allocation4], %s1427_s30  ;;  %s1150_s10 = scalar_lea.vmem %s1556_s6, 2048 }
 0x161   : > { %p1151_p10 = scmp.ne.s32.totalorder %s1556_s6, %s1150_s10  ;;  %s1248_s15 = smov [#allocation7]  }
 0x162   : > { %s1154_s4 = sshll.u32 %s1248_s15, 4  ;;  %s1155_s4 = int_to_ptr.vmem [resolvable:$false] %s1154_s4 }
 0x163   : > { %p1152_p12 = pnand %p1151_p10, %p1622_p5  ;;  %s1156_s5 = scalar_lea.vmem %s1155_s4, 4096 }
 0x164   : > { %p1157_p2 = scmp.lt.s32.totalorder %s1556_s6, %s1155_s4  ;;  %p1158_p9 = scmp.lt.s32.totalorder %s1156_s5, %s1150_s10 }
 0x165   : > { %p1153_p1 = pneg %p1152_p12 }
 0x166   : > { %p1159_p11 = por %p1158_p9, %p1157_p2 }
 0x168   : > { %p1160_p3 = pnand %p1159_p11, %p1153_p1 }
 0x194   : > { %v904_v45 = vpop.f32.mrb[4].mxu0 }
 0x195   : > { %v905_v46 = vpop.f32.mrb[5].mxu0 }
 0x196   : > { %v906_v47 = vadd.f32 %v905_v46, %v904_v45  ;;  %v907_v48 = vpop.f32.mrb[6].mxu0 }
 0x197   : > { %v908_v49 = vpop.f32.mrb[7].mxu0 }
 0x198   : > { %v909_v50 = vadd.f32 %v908_v49, %v907_v48  ;;  %633 = vst [vmem:[%s1533_s11] sm:$0xff] %v906_v47 }
 0x19a   : > { %634 = vst [vmem:[%s1533_s11 + $0x8] sm:$0xff] %v909_v50 }
 0x19c   : > { %v910_v51 = vpop.f32.mrb[8].mxu0  ;;  %v916_v52 = vpop.f32.mrb[0].mxu1 }
 0x19d   : > { %v911_v53 = vpop.f32.mrb[9].mxu0  ;;  %v917_v54 = vpop.f32.mrb[1].mxu1 }
 0x19e   : > { %v912_v55 = vadd.f32 %v911_v53, %v910_v51  ;;  %v918_v56 = vadd.f32 %v917_v54, %v916_v52  ;;  %v913_v57 = vpop.f32.mrb[10].mxu0  ;;  %v919_v58 = vpop.f32.mrb[2].mxu1 }
 0x19f   : > { %v914_v59 = vpop.f32.mrb[11].mxu0  ;;  %v920_v60 = vpop.f32.mrb[3].mxu1 }
 0x1a0   : > { %v915_v61 = vadd.f32 %v914_v59, %v913_v57  ;;  %v921_v62 = vadd.f32 %v920_v60, %v919_v58  ;;  %635 = vst [vmem:[%s1533_s11 + $0x10] sm:$0xff] %v912_v55  ;;  %637 = vst [vmem:[%s1533_s11 + $0x20] sm:$0xff] %v918_v56 }
 0x1a2   : > { %636 = vst [vmem:[%s1533_s11 + $0x18] sm:$0xff] %v915_v61  ;;  %638 = vst [vmem:[%s1533_s11 + $0x28] sm:$0xff] %v921_v62 }
 0x1a4   : > { %v922_v63 = vpop.f32.mrb[4].mxu1 }
 0x1a5   : > { %v923_v0 = vpop.f32.mrb[5].mxu1 }
 0x1a6   : > { %v924_v1 = vadd.f32 %v923_v0, %v922_v63  ;;  %v925_v2 = vpop.f32.mrb[6].mxu1 }
 0x1a7   : > { %v926_v3 = vpop.f32.mrb[7].mxu1 }
 0x1a8   : > { %v927_v4 = vadd.f32 %v926_v3, %v925_v2  ;;  %639 = vst [vmem:[%s1533_s11 + $0x30] sm:$0xff] %v924_v1 }
 0x1aa   : > { %640 = vst [vmem:[%s1533_s11 + $0x38] sm:$0xff] %v927_v4 }
 0x1ac   : > { %v928_v5 = vpop.f32.mrb[8].mxu1 }
 0x1ad   : > { %v929_v6 = vpop.f32.mrb[9].mxu1 }
 0x1ae   : > { %v930_v7 = vadd.f32 %v929_v6, %v928_v5  ;;  %v931_v8 = vpop.f32.mrb[10].mxu1 }
 0x1af   : > { %v932_v9 = vpop.f32.mrb[11].mxu1 }
 0x1b0   : > { %v933_v10 = vadd.f32 %v932_v9, %v931_v8  ;;  %641 = vst [vmem:[%s1533_s11 + $0x40] sm:$0xff] %v930_v7 }
 0x1b2   : > { %642 = vst [vmem:[%s1533_s11 + $0x48] sm:$0xff] %v933_v10 }
 0x1b4   : > { %v934_v11 = vpop.f32.mrb[12].mxu1 }
 0x1b5   : > { %v935_v12 = vpop.f32.mrb[13].mxu1 }
 0x1b6   : > { %v936_v13 = vadd.f32 %v935_v12, %v934_v11  ;;  %v937_v14 = vpop.f32.mrb[14].mxu1 }
 0x1b7   : > { %v938_v15 = vpop.f32.mrb[15].mxu1 }
 0x1b8   : > { %v939_v16 = vadd.f32 %v938_v15, %v937_v14  ;;  %643 = vst [vmem:[%s1533_s11 + $0x50] sm:$0xff] %v936_v13 }
 0x1ba   : > { %644 = vst [vmem:[%s1533_s11 + $0x58] sm:$0xff] %v939_v16 }
 0x1bc   : > { %v940_v17 = vpop.f32.mrb[16].mxu1 }
 0x1bd   : > { %v941_v18 = vpop.f32.mrb[17].mxu1 }
 0x1be   : > { %v942_v19 = vadd.f32 %v941_v18, %v940_v17  ;;  %v943_v20 = vpop.f32.mrb[18].mxu1 }
 0x1bf   : > { %v944_v21 = vpop.f32.mrb[19].mxu1 }
 0x1c0   : > { %v945_v22 = vadd.f32 %v944_v21, %v943_v20  ;;  %645 = vst [vmem:[%s1533_s11 + $0x60] sm:$0xff] %v942_v19 }
 0x1c2   : > { %646 = vst [vmem:[%s1533_s11 + $0x68] sm:$0xff] %v945_v22 }
 0x1c4   : > { %v946_v23 = vpop.f32.mrb[20].mxu1 }
 0x1c5   : > { %v947_v24 = vpop.f32.mrb[21].mxu1 }
 0x1c6   : > { %v948_v25 = vadd.f32 %v947_v24, %v946_v23  ;;  %v949_v26 = vpop.f32.mrb[22].mxu1 }
 0x1c7   : > { %v950_v27 = vpop.f32.mrb[23].mxu1 }
 0x1c8   : > { %v951_v28 = vadd.f32 %v950_v27, %v949_v26  ;;  %647 = vst [vmem:[%s1533_s11 + $0x70] sm:$0xff] %v948_v25 }
 0x1ca   : > { %648 = vst [vmem:[%s1533_s11 + $0x78] sm:$0xff] %v951_v28 }
 0x1cb   : > { %1163 = shalt.err (!%p1160_p3)
}
 0x1cc   : > { %s1164_s18 = scalar_lea.hbm %s1554_s23, 2048  ;;  %s1168_s24 = scalar_lea.hbm %s1609_s2, 4096 }
 0x1cd   : > { %p1165_p6 = scmp.ne.s32.totalorder %s1554_s23, %s1164_s18  ;;  %p1169_p0 = scmp.lt.u32.totalorder %s1554_s23, %s1609_s2 }
 0x1ce   : > { %p1170_p7 = scmp.lt.u32.totalorder %s1168_s24, %s1164_s18  ;;  %p1172_p10 = scmp.lt.u32.totalorder %s1164_s18, %s1554_s23 }
 0x1cf   : > { %p1166_p4 = pnand %p1165_p6, %p1622_p5 }
 0x1d0   : > { %p1171_p13 = por %p1170_p7, %p1169_p0 }
 0x1d1   : > { %p1167_p8 = pneg %p1166_p4 }
 0x1d2   : > { %p1173_p12 = por %p1172_p10, %p1171_p13 }
 0x1d4   : > { %p1174_p1 = pnand %p1173_p12, %p1167_p8 }
 0x1d6   : > { %1177 = shalt.err (!%p1174_p1)
}
 0x1d7   : > { %s1249_s11 = smov 128   ;;  %s1250_s28 = smov 8  }
 0x1d8   : > { %972 = dma.vmem_to_hbm [thread:$0]  (%p1622_p5), %s1556_s6, 2048, %s1554_s23, %s650_s8, %s1249_s11, %s1249_s11, %s1250_s28  }
 0x1d9 PF: > { %s696_s19 = sand.u32 1, %s1220_s12   ;;  %p1623_p2 = scmp.ne.s32.totalorder %s1616_s27, 0 }
 0x1da   : > { %p1624_p9 = scmp.ge.s32.totalorder %s1240_s17, 2  ;;  %s697_s21 = scalar_lea.sflag [#allocation4], %s696_s19 }
 0x1dc   : > { %p984_p11 = pnand %p1624_p9, %p1623_p2 }
 0x1de   : > { %1211 = dma.done.wait (!%p984_p11), %s697_s21, 2048  }
 0x1df   : > { %1213 = vsyncadd (!%p984_p11), %s697_s21, 4294965248  ;;  %s706_s10 = scalar_lea.sflag [#allocation9], %s696_s19 }
 0x1e0   : > { %1215 = dma.done.wait (!%p984_p11), %s706_s10, 128  }
 0x1e1   : > { %1217 = vsyncadd (!%p984_p11), %s706_s10, 4294967168  ;;  %s26_s17 = sadd.s32 1, %s1240_s17   ;;  %s1625_s12 = smov %s1224_s13 }
 0x1e2   : > { %p23_p3 = scmp.ge.s32.totalorder %s26_s17, 4   ;;  %s1626_s13 = smov %s1228_s14 }
 0x1e3   : > { %s1627_s14 = smov %s1327_s26  ;;  %s1628_s15 = smov %s1236_s16 }
 0x1e4   : > { %s1629_s16 = smov %s1631_s20  ;;  %25 = sbr.rel (!%p23_p3) target bundleno = 10 (0xa), region = 107 }
 0x1eb   :  { %711 = vsyncpa [#allocation3], 1 }
 0x1ec   :  { %713 = vsyncpa [#allocation3 + $0x1], 1 }
 0x1ed   :  { %714 = vsyncpa [#allocation6], 1 }
 0x1ee   :  { %716 = vsyncpa [#allocation6 + $0x1], 1 }
 0x1ef   :  { %717 = vsyncpa [#allocation4], 1 }
 0x1f0   :  { %719 = vsyncpa [#allocation4 + $0x1], 1 }
 0x1f1   :  { %720 = vsyncpa [#allocation9], 1 }
 0x1f2   :  { %722 = vsyncpa [#allocation9 + $0x1], 1 }

</bundles_post_ra>
